<compile_context>
chip_gen: v7x
topology: tpu7x:2x2x1
jax: 0.10.0
libtpu: 0.0.40
codegen_flags: <defaults>
</compile_context>

<pallas_src>
import functools

import jax
import jax.numpy as jnp
import numpy as np
from jax import lax
from jax.experimental import pallas as pl
from jax.experimental.pallas import tpu as pltpu

_LANES = 128


def _round_up(x, m):
    return ((x + m - 1) // m) * m


def _vmem_capacity_bytes():
    # v7x: 64 MiB per TensorCore; v5e/v6e: 128 MiB.  Fall back to the smallest.
    try:
        return int(pltpu.get_tpu_info().vmem_capacity_bytes)
    except Exception:
        return 64 * 1024 * 1024


# ---------------------------------------------------------------------------
# Pass 1: per-group partial sums / counts / sum ||x||^2
#   grid = (num_splits, tiles_per_split): leading axis "parallel" (v7x 2 TCs),
#   inner axis "arbitrary" (reduction into per-split resident accumulators).
# ---------------------------------------------------------------------------
def _stats_kernel(gid_ref, x_ref, accx_ref, accaux_ref, *,
                  n, tiles_per_split, gacc):
    s = pl.program_id(0)
    t = pl.program_id(1)

    @pl.when(t == 0)
    def _init():
        accx_ref[...] = jnp.zeros_like(accx_ref)
        accaux_ref[...] = jnp.zeros_like(accaux_ref)

    x = x_ref[...]                                     # [TN, D]
    gid = gid_ref[...]                                 # [TN, 1] int32
    tn = x.shape[0]

    # Row-validity mask for the partial last tile / redundant clamped steps.
    row0 = (s * tiles_per_split + t) * tn
    rows = row0 + lax.broadcasted_iota(jnp.int32, (tn, 1), 0)
    valid = rows < n
    x = jnp.where(valid, x, 0.0)                       # kill OOB garbage (NaN-safe)
    gid = jnp.where(valid, gid, -1)                    # -1 -> no one-hot column

    # One-hot over (train groups + test group), rebuilt on the VPU.
    grp = lax.broadcasted_iota(jnp.int32, (tn, gacc), 1)
    oh = (grp == gid).astype(jnp.float32)              # [TN, GAcc]

    # Per-group feature sums: transposed-LHS contraction on the MXU.
    accx_ref[...] += lax.dot_general(
        oh, x, (((0,), (0,)), ((), ())),
        preferred_element_type=jnp.float32)[None]      # [1, GAcc, D]

    # Per-group [count | sum ||x||^2 | 0 ...] via a second tiny matmul.
    rowsq = jnp.sum(x * x, axis=1, keepdims=True)      # [TN, 1]
    lane = lax.broadcasted_iota(jnp.int32, (tn, _LANES), 1)
    aux = jnp.where(lane == 0, 1.0, jnp.where(lane == 1, rowsq, 0.0))
    accaux_ref[...] += lax.dot_general(
        oh, aux, (((0,), (0,)), ((), ())),
        preferred_element_type=jnp.float32)[None]      # [1, GAcc, 128]


# ---------------------------------------------------------------------------
# Pass 2: per-node blend (row-parallel -> megacore)
#   out = alpha_node * x + (1 - alpha_node) * mean_node
# ---------------------------------------------------------------------------
def _blend_kernel(gid_ref, x_ref, pmean_ref, palpha_ref, out_ref, *, gacc):
    x = x_ref[...]                                     # [TN, D]
    gid = gid_ref[...]                                 # [TN, 1]
    tn = x.shape[0]

    grp = lax.broadcasted_iota(jnp.int32, (tn, gacc), 1)
    oh = (grp == gid).astype(jnp.float32)              # [TN, GAcc]

    # Gather (1 - alpha_g) * mean_g and alpha_g with two tiny matmuls
    # (no cross-lane select/reduce needed).
    mean_term = lax.dot_general(
        oh, pmean_ref[...], (((1,), (0,)), ((), ())),
        preferred_element_type=jnp.float32)            # [TN, D]
    alpha = lax.dot_general(
        oh, palpha_ref[...], (((1,), (0,)), ((), ())),
        preferred_element_type=jnp.float32)            # [TN, 1]

    out_ref[...] = alpha * x + mean_term


# ---------------------------------------------------------------------------
# Wrapper
# ---------------------------------------------------------------------------
@functools.partial(jax.jit,
                   static_argnames=("num_time", "num_label", "split", "tile_rows"))
def _jj_norm_impl(x, labels, times, *, num_time, num_label, split, tile_rows):
    n, d = x.shape
    g = num_time * num_label                # number of (time, label) train groups
    gacc = _round_up(g + 1, 8)              # + test "group", sublane aligned

    # ---- tile sizing / VMEM budgeting (per generation) ---------------------
    cap = _vmem_capacity_bytes()
    vmem_limit = max(32 * 1024 * 1024,
                     min(cap - 16 * 1024 * 1024, 96 * 1024 * 1024))
    max_block_bytes = 8 * 1024 * 1024       # >= ~1-2 MiB saturates HBM BW, and
                                            # 4 such blocks fit v7x's 64 MiB VMEM
    if tile_rows is None:
        tn = max_block_bytes // (d * 4)
    else:
        tn = int(tile_rows)
    tn = max(8, min(tn, 8192, _round_up(n, 8)))
    tn = _round_up(tn, 8)
    n_tiles = (n + tn - 1) // tn

    # ---- per-row group id (tiny [N,1] int32; the only wrapper-built array) --
    train = times < split
    gid = jnp.where(train, times * num_label + labels, g).astype(jnp.int32)[:, None]

    # ---- pass 1: per-group partial accumulators -----------------------------
    num_splits = 2 if n_tiles >= 2 else 1   # 2-TC split on v7x; harmless elsewhere
    tiles_per_split = -(-n_tiles // num_splits)

    def _row_block(s, t):
        # Redundant trailing steps (ragged split) are clamped to the last real
        # block; the kernel's row-validity mask zeroes their contribution.
        return jnp.minimum(s * tiles_per_split + t, n_tiles - 1)

    stats = functools.partial(_stats_kernel, n=n,
                              tiles_per_split=tiles_per_split, gacc=gacc)
    acc_x, acc_aux = pl.pallas_call(
        stats,
        out_shape=(jax.ShapeDtypeStruct((num_splits, gacc, d), jnp.float32),
                   jax.ShapeDtypeStruct((num_splits, gacc, _LANES), jnp.float32)),
        grid_spec=pltpu.PrefetchScalarGridSpec(
            num_scalar_prefetch=0,
            grid=(num_splits, tiles_per_split),
            in_specs=[
                pl.BlockSpec((tn, 1), lambda s, t: (_row_block(s, t), 0)),
                pl.BlockSpec((tn, d), lambda s, t: (_row_block(s, t), 0)),
            ],
            out_specs=(
                pl.BlockSpec((1, gacc, d), lambda s, t: (s, 0, 0)),
                pl.BlockSpec((1, gacc, _LANES), lambda s, t: (s, 0, 0)),
            ),
        ),
        compiler_params=pltpu.CompilerParams(
            dimension_semantics=("parallel", "arbitrary"),
            vmem_limit_bytes=vmem_limit),
    )(gid, x)

    # ---- finalize: tiny [GAcc, D] math (plain JAX glue) ----------------------
    sums = jnp.sum(acc_x, axis=0)           # [GAcc, D]  per-group feature sums
    aux = jnp.sum(acc_aux, axis=0)          # [GAcc, 128]
    cnt = aux[:, 0:1]                       # [GAcc, 1]  per-group row counts
    sumsq = aux[:, 1:2]                     # [GAcc, 1]  per-group sum ||x||^2

    g_idx = jnp.arange(gacc)
    is_train_grp = (g_idx < g)[:, None]
    is_test_grp = (g_idx == g)[:, None]
    grp_time = jnp.where(g_idx < g, g_idx // num_label, num_time)
    g2t = (jnp.arange(num_time)[:, None] == grp_time[None, :]).astype(jnp.float32)

    mean = sums / jnp.maximum(1.0, cnt)                                  # [GAcc, D]
    # Within-group sum of squared deviations (sum-of-squares identity, f32).
    ss_within = jnp.maximum(
        sumsq - cnt * jnp.sum(mean * mean, axis=1, keepdims=True), 0.0)  # [GAcc, 1]

    test_cnt = cnt[g, 0]
    test_var = ss_within[g, 0] / jnp.maximum(1.0, test_cnt - 1.0)

    time_cnt = g2t @ cnt                                                 # [T, 1]
    time_mean = (g2t @ sums) / jnp.maximum(1.0, time_cnt)                # [T, D]
    msq_g = cnt * jnp.sum((mean - g2t.T @ time_mean) ** 2,
                          axis=1, keepdims=True)                         # [GAcc, 1]

    dof = jnp.maximum(1.0, time_cnt - 1.0)
    msq_t = (g2t @ msq_g) / dof
    rsq_t = (g2t @ ss_within) / dof
    alpha_sq = (test_var - msq_t) / jnp.maximum(1e-6, rsq_t)
    alpha_t = jnp.where(alpha_sq > 0.0, jnp.sqrt(jnp.maximum(alpha_sq, 0.0)), 0.0)
    alpha_t = jnp.where(time_cnt > 0.0, alpha_t, 0.0)    # empty buckets: keep finite

    alpha_g = g2t.T @ alpha_t                            # [GAcc, 1]
    alpha_full = jnp.where(is_test_grp, 1.0, alpha_g)    # test rows pass through
    pmean = jnp.where(is_train_grp, (1.0 - alpha_full) * mean, 0.0)      # [GAcc, D]
    palpha = alpha_full                                                  # [GAcc, 1]

    # ---- pass 2: per-node blend ---------------------------------------------
    blend = functools.partial(_blend_kernel, gacc=gacc)
    out = pl.pallas_call(
        blend,
        out_shape=jax.ShapeDtypeStruct((n, d), jnp.float32),
        grid_spec=pltpu.PrefetchScalarGridSpec(
            num_scalar_prefetch=0,
            grid=(n_tiles,),
            in_specs=[
                pl.BlockSpec((tn, 1), lambda i: (i, 0)),
                pl.BlockSpec((tn, d), lambda i: (i, 0)),
                pl.BlockSpec((gacc, d), lambda i: (0, 0)),
                pl.BlockSpec((gacc, 1), lambda i: (0, 0)),
            ],
            out_specs=pl.BlockSpec((tn, d), lambda i: (i, 0)),
        ),
        compiler_params=pltpu.CompilerParams(
            dimension_semantics=("parallel",),           # megacore on v7x
            vmem_limit_bytes=vmem_limit),
    )(gid, x, pmean, palpha)
    return out


def jj_norm(x, labels, times, num_time, num_label, split, tile_rows=None):
    return _jj_norm_impl(
        jnp.asarray(x, jnp.float32),
        jnp.asarray(labels, jnp.int32),
        jnp.asarray(times, jnp.int32),
        num_time=int(num_time), num_label=int(num_label), split=int(split),
        tile_rows=None if tile_rows is None else int(tile_rows))


# ---------------------------------------------------------------------------
# Reference (direct NumPy transcription of the PyTorch forward, float64)
# ---------------------------------------------------------------------------
def jj_norm_ref(x, labels, times, num_time, num_label, split):
    x = np.asarray(x, dtype=np.float64)
    labels = np.asarray(labels)
    times = np.asarray(times)
    N, D = x.shape
    train_idx = np.nonzero(times < split)[0]
    test_idx = np.nonzero(times >= split)[0]

    clone = x.copy()
    train_mean = np.zeros((num_time, num_label, D))
    train_cnt = np.zeros((num_time, num_label))
    train_time_mean = np.zeros((num_time, D))
    train_time_cnt = np.zeros(num_time)
    test_cnt = 0.0
    test_mean = np.zeros(D)
    for u in test_idx:
        test_cnt += 1
        test_mean += x[u]
    for u in train_idx:
        t = times[u]
        train_time_cnt[t] += 1
        train_cnt[t, labels[u]] += 1
        train_mean[t, labels[u]] += x[u]
    for t in range(num_time):
        for l in range(num_label):
            train_time_mean[t] += train_mean[t, l]
            train_mean[t, l] = train_mean[t, l] / max(1, train_cnt[t, l])
        train_time_mean[t] /= max(1, train_time_cnt[t])
    test_mean /= max(1, test_cnt)
    test_var = 0.0
    rsq = np.zeros(num_time)
    msq = np.zeros(num_time)
    for u in test_idx:
        test_var += np.sum((x[u] - test_mean) ** 2)
    for u in train_idx:
        t = times[u]
        msq[t] += np.sum((train_mean[t, labels[u]] - train_time_mean[t]) ** 2)
        rsq[t] += np.sum((x[u] - train_mean[t, labels[u]]) ** 2)
    test_var /= max(1, test_cnt - 1)
    for t in range(split):
        msq[t] /= max(1, train_time_cnt[t] - 1)
        rsq[t] /= max(1, train_time_cnt[t] - 1)
    alpha = np.ones(split)
    for t in range(split):
        a2 = (test_var - msq[t]) / max(1e-6, rsq[t])
        alpha[t] = np.sqrt(a2) if a2 > 0 else 0.0
    for u in train_idx:
        t = times[u]
        clone[u] = alpha[t] * x[u] + (1 - alpha[t]) * train_mean[t, labels[u]]
    return clone


if __name__ == "__main__":
    num_time, num_label, split = 4, 3, 3

    # Case 1: small problem (single row tile), matches the module's forward.
    N, D = 16, 32
    kx, kt, kl = jax.random.split(jax.random.PRNGKey(0), 3)
    x = jax.random.normal(kx, (N, D), dtype=jnp.float32)
    times = jax.random.randint(kt, (N,), 0, num_time, dtype=jnp.int32)
    labels = jax.random.randint(kl, (N,), 0, num_label, dtype=jnp.int32)

    out = jax.block_until_ready(jj_norm(x, labels, times, num_time, num_label, split))
    ref = jj_norm_ref(np.array(x), np.array(labels), np.array(times),
                      num_time, num_label, split)
    np.testing.assert_allclose(np.array(out), ref, rtol=2e-3, atol=2e-3)

    # Case 2: multi-tile grid over N with a partial last tile (600 = 2*256 + 88)
    # and a 2-way split of the stats reduction (exercises the clamped redundant
    # grid step and the row-parallel blend over a non-divisible N).
    N2, D2 = 600, 32
    kx2, kt2, kl2 = jax.random.split(jax.random.PRNGKey(1), 3)
    x2 = jax.random.normal(kx2, (N2, D2), dtype=jnp.float32)
    times2 = jax.random.randint(kt2, (N2,), 0, num_time, dtype=jnp.int32)
    labels2 = jax.random.randint(kl2, (N2,), 0, num_label, dtype=jnp.int32)

    out2 = jax.block_until_ready(
        jj_norm(x2, labels2, times2, num_time, num_label, split, tile_rows=256))
    ref2 = jj_norm_ref(np.array(x2), np.array(labels2), np.array(times2),
                       num_time, num_label, split)
    np.testing.assert_allclose(np.array(out2), ref2, rtol=2e-3, atol=2e-3)

    print("KERNEL_OK")
</pallas_src>

<mosaic_0001>
module attributes {stable_mosaic.version = 11 : i64} {
  func.func @_stats_kernel(%arg0: i32, %arg1: i32, %arg2: memref<16x1xi32, #tpu.memory_space<vmem>>, %arg3: memref<16x32xf32, #tpu.memory_space<vmem>>, %arg4: memref<1x16x32xf32, #tpu.memory_space<vmem>>, %arg5: memref<1x16x128xf32, #tpu.memory_space<vmem>>) attributes {dimension_semantics = [#tpu.dimension_semantics<parallel>, #tpu.dimension_semantics<arbitrary>], iteration_bounds = array<i64: 1, 1>, scalar_prefetch = 0 : i64, scratch_operands = 0 : i64, tpu.core_type = #tpu.core_type<tc>, window_params = [{transform_indices = @transform_0, window_bounds = array<i64: 16, 1>}, {transform_indices = @transform_1, window_bounds = array<i64: 16, 32>}, {transform_indices = @transform_2, window_bounds = array<i64: 1, 16, 32>}, {transform_indices = @transform_3, window_bounds = array<i64: 1, 16, 128>}]} {
    %c0_i32 = arith.constant 0 : i32
    %0 = arith.cmpi eq, %arg1, %c0_i32 : i32
    %1 = arith.extui %0 : i1 to i32
    %c0_i32_0 = arith.constant 0 : i32
    %2 = arith.cmpi ne, %1, %c0_i32_0 : i32
    scf.if %2 {
      %cst_24 = arith.constant 0.000000e+00 : f32
      %48 = vector.broadcast %cst_24 : f32 to vector<1x16x32xf32>
      %c0_25 = arith.constant 0 : index
      %c0_26 = arith.constant 0 : index
      %c0_27 = arith.constant 0 : index
      %49 = vector.load %arg4[%c0_25, %c0_26, %c0_27] : memref<1x16x32xf32, #tpu.memory_space<vmem>>, vector<1x16x32xf32>
      tpu.vector_store %arg4[%c0_25, %c0_26, %c0_27], %48 {strides = array<i32>} : memref<1x16x32xf32, #tpu.memory_space<vmem>>, vector<1x16x32xf32>,
      %cst_28 = arith.constant 0.000000e+00 : f32
      %50 = vector.broadcast %cst_28 : f32 to vector<1x16x128xf32>
      %c0_29 = arith.constant 0 : index
      %c0_30 = arith.constant 0 : index
      %c0_31 = arith.constant 0 : index
      %51 = vector.load %arg5[%c0_29, %c0_30, %c0_31] : memref<1x16x128xf32, #tpu.memory_space<vmem>>, vector<1x16x128xf32>
      tpu.vector_store %arg5[%c0_29, %c0_30, %c0_31], %50 {strides = array<i32>} : memref<1x16x128xf32, #tpu.memory_space<vmem>>, vector<1x16x128xf32>,
    } else {
    }
    %c0 = arith.constant 0 : index
    %c0_1 = arith.constant 0 : index
    %3 = vector.load %arg3[%c0, %c0_1] : memref<16x32xf32, #tpu.memory_space<vmem>>, vector<16x32xf32>
    %c0_2 = arith.constant 0 : index
    %c0_3 = arith.constant 0 : index
    %4 = vector.load %arg2[%c0_2, %c0_3] : memref<16x1xi32, #tpu.memory_space<vmem>>, vector<16x1xi32>
    %c1_i32 = arith.constant 1 : i32
    %5 = arith.muli %arg0, %c1_i32 : i32
    %6 = arith.addi %5, %arg1 : i32
    %c16_i32 = arith.constant 16 : i32
    %7 = arith.muli %6, %c16_i32 : i32
    %8 = tpu.iota {dimensions = array<i32: 0>} : vector<16x1xi32>
    %9 = vector.broadcast %7 : i32 to vector<16x1xi32>
    %10 = arith.addi %9, %8 : vector<16x1xi32>
    %c16_i32_4 = arith.constant 16 : i32
    %11 = vector.broadcast %c16_i32_4 : i32 to vector<16x1xi32>
    %12 = arith.cmpi slt, %10, %11 : vector<16x1xi32>
    %cst = arith.constant 0.000000e+00 : f32
    %13 = vector.shape_cast %12 : vector<16x1xi1> to vector<16x1xi1>
    %14 = vector.broadcast %13 : vector<16x1xi1> to vector<16x32xi1>
    %15 = vector.broadcast %cst : f32 to vector<16x32xf32>
    %16 = arith.select %14, %3, %15 : vector<16x32xi1>, vector<16x32xf32>
    %c-1_i32 = arith.constant -1 : i32
    %17 = vector.broadcast %c-1_i32 : i32 to vector<16x1xi32>
    %18 = arith.select %12, %4, %17 : vector<16x1xi1>, vector<16x1xi32>
    %19 = tpu.iota {dimensions = array<i32: 1>} : vector<16x16xi32>
    %20 = vector.broadcast %18 : vector<16x1xi32> to vector<16x16xi32>
    %21 = arith.cmpi eq, %19, %20 : vector<16x16xi32>
    %22 = arith.extui %21 : vector<16x16xi1> to vector<16x16xi32>
    %23 = arith.sitofp %22 : vector<16x16xi32> to vector<16x16xf32>
    %c0_5 = arith.constant 0 : index
    %c0_6 = arith.constant 0 : index
    %c0_7 = arith.constant 0 : index
    %24 = vector.load %arg4[%c0_5, %c0_6, %c0_7] : memref<1x16x32xf32, #tpu.memory_space<vmem>>, vector<1x16x32xf32>
    %cst_8 = arith.constant dense<0.000000e+00> : vector<16x32xf32>
    %25 = tpu.matmul %23, %16, %cst_8 {dimension_numbers = #tpu.dot_dimension_numbers<[0], [0], [1], [1], [0, 1, 1, 1], [], []>} : vector<16x16xf32>, vector<16x32xf32>, vector<16x32xf32> -> vector<16x32xf32>
    %26 = vector.shape_cast %25 : vector<16x32xf32> to vector<1x16x32xf32>
    %27 = arith.addf %24, %26 : vector<1x16x32xf32>
    %c0_9 = arith.constant 0 : index
    %c0_10 = arith.constant 0 : index
    %c0_11 = arith.constant 0 : index
    %28 = vector.load %arg4[%c0_9, %c0_10, %c0_11] : memref<1x16x32xf32, #tpu.memory_space<vmem>>, vector<1x16x32xf32>
    tpu.vector_store %arg4[%c0_9, %c0_10, %c0_11], %27 {strides = array<i32>} : memref<1x16x32xf32, #tpu.memory_space<vmem>>, vector<1x16x32xf32>,
    %29 = arith.mulf %16, %16 : vector<16x32xf32>
    %cst_12 = arith.constant dense<0.000000e+00> : vector<16xf32>
    %30 = vector.multi_reduction <add>, %29, %cst_12 [1] : vector<16x32xf32> to vector<16xf32>
    %31 = vector.shape_cast %30 : vector<16xf32> to vector<16x1xf32>
    %32 = tpu.iota {dimensions = array<i32: 1>} : vector<16x128xi32>
    %c0_i32_13 = arith.constant 0 : i32
    %33 = vector.broadcast %c0_i32_13 : i32 to vector<16x128xi32>
    %34 = arith.cmpi eq, %32, %33 : vector<16x128xi32>
    %c1_i32_14 = arith.constant 1 : i32
    %35 = vector.broadcast %c1_i32_14 : i32 to vector<16x128xi32>
    %36 = arith.cmpi eq, %32, %35 : vector<16x128xi32>
    %cst_15 = arith.constant 0.000000e+00 : f32
    %37 = vector.shape_cast %31 : vector<16x1xf32> to vector<16x1xf32>
    %38 = vector.broadcast %37 : vector<16x1xf32> to vector<16x128xf32>
    %39 = vector.broadcast %cst_15 : f32 to vector<16x128xf32>
    %40 = arith.select %36, %38, %39 : vector<16x128xi1>, vector<16x128xf32>
    %cst_16 = arith.constant 1.000000e+00 : f32
    %41 = vector.broadcast %cst_16 : f32 to vector<16x128xf32>
    %42 = arith.select %34, %41, %40 : vector<16x128xi1>, vector<16x128xf32>
    %c0_17 = arith.constant 0 : index
    %c0_18 = arith.constant 0 : index
    %c0_19 = arith.constant 0 : index
    %43 = vector.load %arg5[%c0_17, %c0_18, %c0_19] : memref<1x16x128xf32, #tpu.memory_space<vmem>>, vector<1x16x128xf32>
    %cst_20 = arith.constant dense<0.000000e+00> : vector<16x128xf32>
    %44 = tpu.matmul %23, %42, %cst_20 {dimension_numbers = #tpu.dot_dimension_numbers<[0], [0], [1], [1], [0, 1, 1, 1], [], []>} : vector<16x16xf32>, vector<16x128xf32>, vector<16x128xf32> -> vector<16x128xf32>
    %45 = vector.shape_cast %44 : vector<16x128xf32> to vector<1x16x128xf32>
    %46 = arith.addf %43, %45 : vector<1x16x128xf32>
    %c0_21 = arith.constant 0 : index
    %c0_22 = arith.constant 0 : index
    %c0_23 = arith.constant 0 : index
    %47 = vector.load %arg5[%c0_21, %c0_22, %c0_23] : memref<1x16x128xf32, #tpu.memory_space<vmem>>, vector<1x16x128xf32>
    tpu.vector_store %arg5[%c0_21, %c0_22, %c0_23], %46 {strides = array<i32>} : memref<1x16x128xf32, #tpu.memory_space<vmem>>, vector<1x16x128xf32>,
    return
  }
  func.func @transform_0(%arg0: i32, %arg1: i32) -> (i32, i32) {
    %c1_i32 = arith.constant 1 : i32
    %0 = arith.muli %arg0, %c1_i32 : i32
    %1 = arith.addi %0, %arg1 : i32
    %c0_i32 = arith.constant 0 : i32
    %2 = arith.minsi %1, %c0_i32 : i32
    %c0_i32_0 = arith.constant 0 : i32
    %c0_i32_1 = arith.constant 0 : i32
    return %2, %c0_i32_0 : i32, i32
  }
  func.func @transform_1(%arg0: i32, %arg1: i32) -> (i32, i32) {
    %c1_i32 = arith.constant 1 : i32
    %0 = arith.muli %arg0, %c1_i32 : i32
    %1 = arith.addi %0, %arg1 : i32
    %c0_i32 = arith.constant 0 : i32
    %2 = arith.minsi %1, %c0_i32 : i32
    %c0_i32_0 = arith.constant 0 : i32
    %c0_i32_1 = arith.constant 0 : i32
    return %2, %c0_i32_0 : i32, i32
  }
  func.func @transform_2(%arg0: i32, %arg1: i32) -> (i32, i32, i32) {
    %c0_i32 = arith.constant 0 : i32
    %c0_i32_0 = arith.constant 0 : i32
    %c0_i32_1 = arith.constant 0 : i32
    return %arg0, %c0_i32, %c0_i32_0 : i32, i32, i32
  }
  func.func @transform_3(%arg0: i32, %arg1: i32) -> (i32, i32, i32) {
    %c0_i32 = arith.constant 0 : i32
    %c0_i32_0 = arith.constant 0 : i32
    %c0_i32_1 = arith.constant 0 : i32
    return %arg0, %c0_i32, %c0_i32_0 : i32, i32, i32
  }
}

module attributes {stable_mosaic.version = 11 : i64} {
  func.func @_blend_kernel(%arg0: i32, %arg1: memref<16x1xi32, #tpu.memory_space<vmem>>, %arg2: memref<16x32xf32, #tpu.memory_space<vmem>>, %arg3: memref<16x32xf32, #tpu.memory_space<vmem>>, %arg4: memref<16x1xf32, #tpu.memory_space<vmem>>, %arg5: memref<16x32xf32, #tpu.memory_space<vmem>>) attributes {dimension_semantics = [#tpu.dimension_semantics<parallel>], iteration_bounds = array<i64: 1>, scalar_prefetch = 0 : i64, scratch_operands = 0 : i64, tpu.core_type = #tpu.core_type<tc>, window_params = [{transform_indices = @transform_0, window_bounds = array<i64: 16, 1>}, {transform_indices = @transform_1, window_bounds = array<i64: 16, 32>}, {pipeline_mode = #tpu.pipeline_mode<synchronous>, transform_indices = @transform_2, window_bounds = array<i64: 16, 32>}, {pipeline_mode = #tpu.pipeline_mode<synchronous>, transform_indices = @transform_3, window_bounds = array<i64: 16, 1>}, {transform_indices = @transform_4, window_bounds = array<i64: 16, 32>}]} {
    %c0 = arith.constant 0 : index
    %c0_0 = arith.constant 0 : index
    %0 = vector.load %arg2[%c0, %c0_0] : memref<16x32xf32, #tpu.memory_space<vmem>>, vector<16x32xf32>
    %c0_1 = arith.constant 0 : index
    %c0_2 = arith.constant 0 : index
    %1 = vector.load %arg1[%c0_1, %c0_2] : memref<16x1xi32, #tpu.memory_space<vmem>>, vector<16x1xi32>
    %2 = tpu.iota {dimensions = array<i32: 1>} : vector<16x16xi32>
    %3 = vector.broadcast %1 : vector<16x1xi32> to vector<16x16xi32>
    %4 = arith.cmpi eq, %2, %3 : vector<16x16xi32>
    %5 = arith.extui %4 : vector<16x16xi1> to vector<16x16xi32>
    %6 = arith.sitofp %5 : vector<16x16xi32> to vector<16x16xf32>
    %c0_3 = arith.constant 0 : index
    %c0_4 = arith.constant 0 : index
    %7 = vector.load %arg3[%c0_3, %c0_4] : memref<16x32xf32, #tpu.memory_space<vmem>>, vector<16x32xf32>
    %cst = arith.constant dense<0.000000e+00> : vector<16x32xf32>
    %8 = tpu.matmul %6, %7, %cst {dimension_numbers = #tpu.dot_dimension_numbers<[1], [0], [0], [1], [0, 0, 1, 1], [], []>} : vector<16x16xf32>, vector<16x32xf32>, vector<16x32xf32> -> vector<16x32xf32>
    %c0_5 = arith.constant 0 : index
    %c0_6 = arith.constant 0 : index
    %9 = vector.load %arg4[%c0_5, %c0_6] : memref<16x1xf32, #tpu.memory_space<vmem>>, vector<16x1xf32>
    %cst_7 = arith.constant dense<0.000000e+00> : vector<16x1xf32>
    %10 = tpu.matmul %6, %9, %cst_7 {dimension_numbers = #tpu.dot_dimension_numbers<[1], [0], [0], [1], [0, 0, 1, 1], [], []>} : vector<16x16xf32>, vector<16x1xf32>, vector<16x1xf32> -> vector<16x1xf32>
    %11 = vector.broadcast %10 : vector<16x1xf32> to vector<16x32xf32>
    %12 = arith.mulf %11, %0 : vector<16x32xf32>
    %13 = arith.addf %12, %8 : vector<16x32xf32>
    %c0_8 = arith.constant 0 : index
    %c0_9 = arith.constant 0 : index
    %14 = vector.load %arg5[%c0_8, %c0_9] : memref<16x32xf32, #tpu.memory_space<vmem>>, vector<16x32xf32>
    tpu.vector_store %arg5[%c0_8, %c0_9], %13 {strides = array<i32>} : memref<16x32xf32, #tpu.memory_space<vmem>>, vector<16x32xf32>,
    return
  }
  func.func @transform_0(%arg0: i32) -> (i32, i32) {
    %c0_i32 = arith.constant 0 : i32
    %c0_i32_0 = arith.constant 0 : i32
    return %arg0, %c0_i32 : i32, i32
  }
  func.func @transform_1(%arg0: i32) -> (i32, i32) {
    %c0_i32 = arith.constant 0 : i32
    %c0_i32_0 = arith.constant 0 : i32
    return %arg0, %c0_i32 : i32, i32
  }
  func.func @transform_2(%arg0: i32) -> (i32, i32) {
    %c0_i32 = arith.constant 0 : i32
    %c0_i32_0 = arith.constant 0 : i32
    %c0_i32_1 = arith.constant 0 : i32
    return %c0_i32, %c0_i32_0 : i32, i32
  }
  func.func @transform_3(%arg0: i32) -> (i32, i32) {
    %c0_i32 = arith.constant 0 : i32
    %c0_i32_0 = arith.constant 0 : i32
    %c0_i32_1 = arith.constant 0 : i32
    return %c0_i32, %c0_i32_0 : i32, i32
  }
  func.func @transform_4(%arg0: i32) -> (i32, i32) {
    %c0_i32 = arith.constant 0 : i32
    %c0_i32_0 = arith.constant 0 : i32
    return %arg0, %c0_i32 : i32, i32
  }
}

</mosaic_0001>

<bundles_post_ra>
// kernel: _jj_norm_impl.2
= control target key start
LH: loop header
LB: loop body
LE: loop exit
PB: predicated region body
PF: predicated region fallthrough
CT: control target
= control target key end

     0   :  { %v397_v0 = vmov 0   ;;  %vm81_vm0 = vcmask 261120   ;;  %v108_v9 = vlaneseq  ;;  %v398_v12 = vmov 0.0   ;;  %s461_s0 = inlined_call_operand.vmem [shape: s32[16,1], index: 0, kind: input, shape index: {}]   ;;  %s462_s1 = inlined_call_operand.vmem [shape: f32[16,32], index: 1, kind: input, shape index: {}]   ;;  %s463_s2 = inlined_call_operand.vmem [shape: f32[1,16,32], index: 2, kind: output, shape index: {0}]   ;;  %s464_s3 = inlined_call_operand.vmem [shape: f32[1,16,128], index: 3, kind: output, shape index: {1}]  }
   0x1   :  { %396 = vset.pattern.permute.xlu0 %v397_v0  ;;  %v88_v1 = vld [vmem:[%s461_s0] sm:$0xff]  ;;  %v87_v4 = vld [vmem:[%s462_s1 + $0x8] sm:$0xff]  ;;  %83 = vst.msk [vmem:[%s463_s2 + $0x8] sm:$0xff] %vm81_vm0, %v398_v12  ;;  %82 = vst.msk [vmem:[%s463_s2] sm:$0xff] %vm81_vm0, %v398_v12  ;;  %vm156_vm5 = vcmask 130048  }
   0x2   :  { %v86_v2 = vld [vmem:[%s462_s1] sm:$0xff]  ;;  %111 = vperm.xlu0 %396, %v88_v1   ;;  %v89_v5 = vld [vmem:[%s461_s0 + $0x8] sm:$0xff]  ;;  %v244_v6 = vmul.f32 %v87_v4, %v87_v4  ;;  %v109_v10 = vand.u32 127, %v108_v9 }
   0x3   :  { %v243_v3 = vmul.f32 %v86_v2, %v86_v2  ;;  %v386_v14 = vpack.c.bf16 %v87_v4, %v86_v2 }
   0x4   :  { %v248_v8 = vsel %vm81_vm0, %v244_v6, 0.0  ;;  %vm252_vm3 = vcmp.eq.s32.totalorder %v109_v10, 1  ;;  %vm251_vm4 = vcmp.eq.s32.totalorder %v109_v10, 0 }
   0x5   :  { %v245_v7 = vsel %vm81_vm0, %v243_v3, 0.0  ;;  %387 = vmatprep.subr.bf16.mxu0 %v386_v14 }
   0x6   :  { %246 = vadd.xlane.f32.xlu1 %v245_v7  ;;  %114 = vperm.xlu0 %396, %v89_v5  }
   0x7   :  { %389 = vmatpush3.bf16.msra.mxu0 %v386_v14 }
   0x8   :  { %v123_v26 = vld [vmem:[%s463_s2 + $0x8] sm:$0xff]  ;;  %v122_v27 = vld [vmem:[%s463_s2] sm:$0xff] }
   0xa   :  { %249 = vadd.xlane.f32.xlu1 %v248_v8 }
  0x81   :  { %v112_v11 = vpop.permute.xlu0 %111 }
  0x82   :  { %vm116_vm1 = vcmp.eq.s32.totalorder %v109_v10, %v112_v11 }
  0x83   :  { %v358_v13 = vsel %vm116_vm1, 1.0, %v398_v12 }
  0x84   :  { %124 = vxpose.xlu0.b32.start [1/2] (short) (narrow) %v358_v13, 16 }
  0x85   :  { %v115_v15 = vpop.permute.xlu0 %114 }
  0x86   :  { %vm117_vm2 = vcmp.eq.s32.totalorder %v109_v10, %v115_v15 }
  0x87   :  { %v359_v16 = vsel %vm117_vm2, 1.0, %v398_v12 }
  0x88   :  { %125 = vxpose.xlu0.b32.end [2/2] (short) (narrow) %v359_v16, 16 }
  0x93   :  { %v247_v17 = vpop.xlane.xlu1 %246 }
  0x94   :  { %v253_v18 = vsel %vm252_vm3, %v247_v17, 0.0 }
  0x95   :  { %v255_v19 = vsel %vm251_vm4, 1.0, %v253_v18 }
  0x97   :  { %v250_v20 = vpop.xlane.xlu1 %249 }
  0x98   :  { %v254_v21 = vsel %vm252_vm3, %v250_v20, 0.0 }
  0x99   :  { %v256_v22 = vsel %vm251_vm4, 1.0, %v254_v21 }
  0x9a   :  { %v390_v23 = vpack.c.bf16 %v256_v22, %v255_v19 }
  0x9c   :  { %391 = vmatprep.subr.bf16.mxu1 %v390_v23 }
  0x9d   :  { %393 = vmatpush3.bf16.msra.mxu1 %v390_v23 }
 0x104   :  { %v140_v24 = vpop.trf.xlu0 }
 0x105   :  { %376 = vmatprep.mubr.msk.f32.mxu0 %vm156_vm5, %v140_v24  ;;  %383 = vmatprep.mubr.msk.f32.mxu1 %vm156_vm5, %v140_v24 }
 0x108   :  { %v141_v25 = vpop.trf.xlu0 }
 0x109   :  { %377 = vmatmul.mubr.msk.f32.vlgmr.msra.gmra.mrb[0].mxu0 %vm156_vm5, %v141_v25  ;;  %384 = vmatmul.mubr.msk.f32.vlgmr.msra.gmra.mrb[0].mxu1 %vm156_vm5, %v141_v25 }
 0x1dc   :  { %v378_v28 = vpop.f32.mrb[0].mxu0  ;;  %v385_v29 = vpop.f32.mrb[0].mxu1 }
 0x1dd   :  { %v239_v30 = vadd.f32 %v378_v28, %v123_v26  ;;  %v229_v31 = vpop.f32.mrb[1].mxu0  ;;  %v325_v32 = vpop.f32.mrb[1].mxu1  ;;  %337 = vst [vmem:[%s464_s3 + $0x8] sm:$0xff] %v385_v29 }
 0x1de   :  { %v238_v33 = vadd.f32 %v229_v31, %v122_v27  ;;  %336 = vst [vmem:[%s464_s3] sm:$0xff] %v325_v32 }
 0x1df   :  { %242 = vst.msk [vmem:[%s463_s2 + $0x8] sm:$0xff] %vm81_vm0, %v239_v30 }
 0x1e0   :  { %241 = vst.msk [vmem:[%s463_s2] sm:$0xff] %vm81_vm0, %v238_v33 }

// kernel: _jj_norm_impl.3
= control target key start
LH: loop header
LB: loop body
LE: loop exit
PB: predicated region body
PF: predicated region fallthrough
CT: control target
= control target key end

     0   :  { %s363_s0 = inlined_call_operand.vmem [shape: s32[16,1], index: 0, kind: input, shape index: {}]   ;;  %s364_s1 = inlined_call_operand.vmem [shape: f32[16,32], index: 1, kind: input, shape index: {}]   ;;  %s365_s2 = inlined_call_operand.vmem [shape: f32[16,32], index: 2, kind: input, shape index: {}]   ;;  %s366_s3 = inlined_call_operand.vmem [shape: f32[16,1], index: 3, kind: input, shape index: {}]   ;;  %s367_s4 = inlined_call_operand.hbm [shape: f32[16,32], index: 4, kind: output, shape index: {}]  }
   0x1   :  { %v20_v0 = vld [vmem:[%s363_s0] sm:$0xff] }
   0x2   :  { %9 = vsyncpa [#allocation3], 0  ;;  %v297_v1 = vmov 0   ;;  %v36_v2 = vld [vmem:[%s365_s2] sm:$0xff]  ;;  %v37_v3 = vld [vmem:[%s365_s2 + $0x8] sm:$0xff]  ;;  %v22_v9 = vlaneseq  ;;  %vm38_vm0 = vcmask 130048  }
   0x3   :  { %271 = vset.pattern.permute.xlu0 %v297_v1  ;;  %v120_v4 = vld [vmem:[%s366_s3] sm:$0xff]  ;;  %272 = vset.pattern.permute.xlu1 %v297_v1  ;;  %v258_v5 = vpack.c.bf16 %v37_v3, %v36_v2  ;;  %v121_v6 = vld [vmem:[%s366_s3 + $0x8] sm:$0xff]  ;;  %v298_v12 = vmov 0.0   ;;  %vm211_vm3 = vcmask 261120   ;;  %s299_s28 = smov [#allocation2]  }
   0x4   :  { %25 = vperm.xlu0 %271, %v20_v0   ;;  %v21_v7 = vld [vmem:[%s363_s0 + $0x8] sm:$0xff]  ;;  %v262_v8 = vpack.c.bf16 %v121_v6, %v120_v4  ;;  %v23_v10 = vand.u32 127, %v22_v9  ;;  %v18_v20 = vld [vmem:[%s364_s1] sm:$0xff]  ;;  %s219_s29 = sshll.u32 %s299_s28, 4  ;;  %s220_s29 = int_to_ptr.vmem [resolvable:$true] %s219_s29 }
   0x5   :  { %259 = vmatprep.subr.bf16.mxu0 %v258_v5  ;;  %v19_v23 = vld [vmem:[%s364_s1 + $0x8] sm:$0xff]  ;;  %s273_s30 = scalar_lea.vmem %s220_s29, 256  ;;  %p278_p1 = scmp.lt.s32.totalorder %s220_s29, %s220_s29 }
   0x6   :  { %263 = vmatprep.subr.bf16.mxu1 %v262_v8  ;;  %261 = vmatpush3.bf16.msra.mxu0 %v258_v5  ;;  %p274_p0 = scmp.ne.s32.totalorder %s220_s29, %s273_s30  ;;  %p279_p2 = scmp.lt.s32.totalorder %s273_s30, %s273_s30 }
   0x7   :  { %265 = vmatpush3.bf16.msra.mxu1 %v262_v8 }
   0x8   :  { %28 = vperm.xlu0 %271, %v21_v7   ;;  %p280_p3 = por %p279_p2, %p278_p1 }
   0xa   :  { %p281_p4 = pnand %p280_p3, %p274_p0 }
  0x83   :  { %v26_v11 = vpop.permute.xlu0 %25 }
  0x84   :  { %vm30_vm1 = vcmp.eq.s32.totalorder %v23_v10, %v26_v11 }
  0x85   :  { %v230_v13 = vsel %vm30_vm1, 1.0, %v298_v12 }
  0x86   :  { %248 = vmatprep.mubr.msk.f32.mxu0 %vm38_vm0, %v230_v13  ;;  %255 = vmatprep.mubr.msk.f32.mxu1 %vm38_vm0, %v230_v13 }
  0x87   :  { %v29_v14 = vpop.permute.xlu0 %28 }
  0x88   :  { %vm31_vm2 = vcmp.eq.s32.totalorder %v23_v10, %v29_v14 }
  0x89   :  { %v231_v15 = vsel %vm31_vm2, 1.0, %v298_v12 }
  0x8a   :  { %249 = vmatmul.mubr.msk.f32.vlgmr.msra.gmra.mrb[0].mxu0 %vm38_vm0, %v231_v15  ;;  %256 = vmatmul.mubr.msk.f32.vlgmr.msra.gmra.mrb[0].mxu1 %vm38_vm0, %v231_v15 }
 0x15d   :  { %v250_v16 = vpop.f32.mrb[0].mxu0  ;;  %v257_v17 = vpop.f32.mrb[0].mxu1 }
 0x15e   :  { %v111_v18 = vpop.f32.mrb[1].mxu0  ;;  %v188_v19 = vpop.f32.mrb[1].mxu1 }
 0x15f   :  { %199 = vperm.xlu1 %272, %v188_v19  }
 0x163   :  { %204 = vperm.xlu1 %272, %v257_v17  }
 0x1de   :  { %v200_v21 = vpop.permute.xlu1 %199 }
 0x1df   :  { %v207_v22 = vmul.f32 %v200_v21, %v18_v20 }
 0x1e1   :  { %v209_v24 = vadd.f32 %v207_v22, %v111_v18 }
 0x1e2   :  { %v205_v25 = vpop.permute.xlu1 %204 }
 0x1e3   :  { %212 = vst.msk [vmem:[#allocation2] sm:$0xff] %vm211_vm3, %v209_v24  ;;  %v208_v26 = vmul.f32 %v205_v25, %v19_v23 }
 0x1e5   :  { %v210_v27 = vadd.f32 %v250_v16, %v208_v26 }
 0x1e7   :  { %213 = vst.msk [vmem:[#allocation2 + $0x8] sm:$0xff] %vm211_vm3, %v210_v27 }
 0x1e8   :  { %284 = shalt.err (!%p281_p4)
}
 0x1e9   :  { %s285_s1 = scalar_lea.hbm %s367_s4, 256 }
 0x1ea   :  { %p286_p5 = scmp.ne.s32.totalorder %s367_s4, %s285_s1  ;;  %p289_p6 = scmp.lt.u32.totalorder %s285_s1, %s367_s4 }
 0x1ec   :  { %p291_p7 = pnand %p289_p6, %p286_p5 }
 0x1ee   :  { %294 = shalt.err (!%p291_p7)
}
 0x1ef   :  { %s300_s11 = smov 128   ;;  %s301_s12 = smov 8  }
 0x1f0   :  { %225 = dma.vmem_to_hbm [thread:$0]  %s220_s29, 256, %s367_s4, [#allocation3], %s300_s11, %s300_s11, %s301_s12  }
 0x1f1   :  { %295 = dma.done.wait [#allocation3], 256  }
 0x1f2   :  { %296 = vsyncadd [#allocation3], 4294967040 }
 0x1f3   :  { %229 = vsyncpa [#allocation3], 1 }

</bundles_post_ra>
